<compile_context>
chip_gen: v7x
topology: tpu7x:2x2x1
jax: 0.10.0
libtpu: 0.0.40
codegen_flags: <defaults>
</compile_context>

<pallas_src>
import functools

import numpy as np

import jax
import jax.numpy as jnp
from jax.experimental import pallas as pl
from jax.experimental.pallas import tpu as pltpu

EPS = 1e-5                     # nn.BatchNorm2d default
MATMUL_DTYPE = jnp.bfloat16    # MXU operand dtype; accumulation / BN stay f32


def _double_conv_kernel(x_ref, t1_ref, t2_ref, g1_ref, b1_ref, g2_ref, b2_ref,
                        out_ref, col1_ref, col2_ref, *, cout, width):
    """Fused (conv3x3 -> BN(train) -> ReLU) x 2, single grid step.

    x_ref   : (N, H, W*Cin)        input rows, channels minor (lane axis)
    t1_ref  : (3*W*Cin,  W*Cout)   stage-1 K-stacked banded tap matrix (bf16)
    t2_ref  : (3*W*Cout, W*Cout)   stage-2 K-stacked banded tap matrix (bf16)
    g*_ref, b*_ref : (1, W*Cout)   BN gamma / beta tiled over W (f32)
    out_ref : (N, H, W*Cout)       lane-dense output rows (f32)
    col1_ref: (N, H, 3*W*Cin)      VMEM im2col scratch, stage 1
    col2_ref: (N, H, 3*W*Cout)     VMEM im2col scratch, stage 2
    """
    N, H, lin = x_ref.shape
    L = out_ref.shape[-1]              # W * Cout
    R = N * H                          # matmul M dimension
    inv_cnt = 1.0 / float(R * width)   # 1 / (N*H*W)

    def lane_group_sum(row):
        # (1, L) -> (1, L): every lane ends up holding the sum over all W
        # lane-groups of its channel.  Circular roll butterfly on the XLU
        # (shift by Cout, 2*Cout, 4*Cout, ...); requires W to be a power of 2.
        shift = cout
        while shift < L:
            row = row + pltpu.roll(row, shift=shift, axis=1)
            shift *= 2
        return row

    def bn_relu(acc, g_row, b_row):
        # acc: (R, L) f32 conv accumulator.  Training-mode BN: batch mean,
        # biased variance, eps=1e-5.  Row-sum first (cheap sublane reduce),
        # then the lane-group reduce -> no (R,L)@(L,L) stats matmuls.
        s = jnp.sum(acc, axis=0, keepdims=True)                    # (1, L)
        mean_row = lane_group_sum(s) * inv_cnt                     # (1, L)
        d = acc - mean_row
        s2 = jnp.sum(d * d, axis=0, keepdims=True)                 # (1, L)
        var_row = lane_group_sum(s2) * inv_cnt
        scale = g_row * jax.lax.rsqrt(var_row + EPS)               # EUP rsqrt
        return jnp.maximum(d * scale + b_row, 0.0)                 # BN + ReLU

    # ---- stage 1: im2col over H (dh-major, channels minor), K = 3*W*Cin ----
    x = x_ref[...]
    z_in = jnp.zeros((N, 1, lin), jnp.float32)
    col1_ref[:, :, lin:2 * lin] = x                                 # dh = 1
    col1_ref[:, 1:H, 0:lin] = x[:, 0:H - 1, :]                      # dh = 0
    col1_ref[:, 0:1, 0:lin] = z_in                                  #   halo row
    col1_ref[:, 0:H - 1, 2 * lin:3 * lin] = x[:, 1:H, :]            # dh = 2
    col1_ref[:, H - 1:H, 2 * lin:3 * lin] = z_in                    #   halo row
    xs1 = col1_ref[...].reshape(R, 3 * lin).astype(MATMUL_DTYPE)
    acc1 = jnp.dot(xs1, t1_ref[...],
                   preferred_element_type=jnp.float32)              # one MXU pass
    z1 = bn_relu(acc1, g1_ref[...], b1_ref[...])                    # (R, L) f32

    # ---- stage 2: im2col of the stage-1 activation (stays in VMEM) ---------
    z1n = z1.reshape(N, H, L)
    z_mid = jnp.zeros((N, 1, L), jnp.float32)
    col2_ref[:, :, L:2 * L] = z1n                                    # dh = 1
    col2_ref[:, 1:H, 0:L] = z1n[:, 0:H - 1, :]                       # dh = 0
    col2_ref[:, 0:1, 0:L] = z_mid
    col2_ref[:, 0:H - 1, 2 * L:3 * L] = z1n[:, 1:H, :]               # dh = 2
    col2_ref[:, H - 1:H, 2 * L:3 * L] = z_mid
    xs2 = col2_ref[...].reshape(R, 3 * L).astype(MATMUL_DTYPE)
    acc2 = jnp.dot(xs2, t2_ref[...],
                   preferred_element_type=jnp.float32)
    z2 = bn_relu(acc2, g2_ref[...], b2_ref[...])

    out_ref[...] = z2.reshape(N, H, L)                               # lane-dense


def _band_taps(w_oihw, W):
    """(Cout, Cin, 3, 3) PyTorch weight -> (3*W*Cin, W*Cout) K-stacked taps.

    taps[dh*W*Cin + wi*Cin + c, wo*Cout + o] = w[o, c, dh, wi - wo + 1]
    for wi - wo + 1 in {0,1,2}; zero otherwise.  The W-direction zero padding
    of the conv is folded in (out-of-range taps simply have no row).
    """
    Cout, Cin, KH, KW = map(int, w_oihw.shape)
    sel = np.zeros((KW, W, W), np.float32)          # sel[dw, w_in, w_out]
    for dw in range(KW):
        for wo in range(W):
            wi = wo + dw - 1
            if 0 <= wi < W:
                sel[dw, wi, wo] = 1.0
    w_t = jnp.transpose(w_oihw, (2, 3, 1, 0)).astype(jnp.float32)   # (KH,KW,Cin,Cout)
    taps = jnp.einsum("apq,hacu->hpcqu", jnp.asarray(sel), w_t)     # (KH,W,Cin,W,Cout)
    return taps.reshape(KH * W * Cin, W * Cout)


@jax.jit
def double_conv(x_nchw, w1, g1, b1, w2, g2, b2):
    """Forward of DoubleConv.  Input / output are NCHW like PyTorch."""
    N, Cin, H, W = map(int, x_nchw.shape)
    Cout = int(w1.shape[0])
    L = W * Cout
    if W & (W - 1):
        # TODO(synk): non-power-of-two W needs a generic lane-group reduction.
        raise NotImplementedError("lane-roll BN reduction requires W = 2**k")

    # NCHW -> grouped-lane row layout (N, H, W*C), channels minor.
    x_rows = jnp.transpose(x_nchw, (0, 2, 3, 1)).astype(jnp.float32)
    x_rows = x_rows.reshape(N, H, W * Cin)

    t1 = _band_taps(w1, W).astype(MATMUL_DTYPE)     # (3*W*Cin, L)
    t2 = _band_taps(w2, W).astype(MATMUL_DTYPE)     # (3*L, L)

    def tile_row(v):                                # (Cout,) -> (1, W*Cout)
        return jnp.tile(v.astype(jnp.float32), W).reshape(1, L)

    kernel = functools.partial(_double_conv_kernel, cout=Cout, width=W)

    out_rows = pl.pallas_call(
        kernel,
        out_shape=jax.ShapeDtypeStruct((N, H, L), jnp.float32),
        grid=(1,),
        in_specs=[
            pl.BlockSpec((N, H, W * Cin), lambda i: (0, 0, 0)),
            pl.BlockSpec((3 * W * Cin, L), lambda i: (0, 0)),
            pl.BlockSpec((3 * L, L), lambda i: (0, 0)),
            pl.BlockSpec((1, L), lambda i: (0, 0)),
            pl.BlockSpec((1, L), lambda i: (0, 0)),
            pl.BlockSpec((1, L), lambda i: (0, 0)),
            pl.BlockSpec((1, L), lambda i: (0, 0)),
        ],
        out_specs=pl.BlockSpec((N, H, L), lambda i: (0, 0, 0)),
        scratch_shapes=[
            pltpu.VMEM((N, H, 3 * W * Cin), jnp.float32),   # stage-1 im2col
            pltpu.VMEM((N, H, 3 * L), jnp.float32),         # stage-2 im2col
        ],
        compiler_params=pltpu.CompilerParams(
            dimension_semantics=("arbitrary",)),
    )(x_rows, t1, t2, tile_row(g1), tile_row(b1), tile_row(g2), tile_row(b2))

    out = out_rows.reshape(N, H, W, Cout)
    return jnp.transpose(out, (0, 3, 1, 2))         # NHWC -> NCHW


# ---------------- pure-JAX reference (for validation only) ----------------
def _ref_double_conv(x, w1, g1, b1, w2, g2, b2):
    def stage(x, w, g, b):
        y = jax.lax.conv_general_dilated(
            x, w, window_strides=(1, 1), padding="SAME",
            dimension_numbers=("NCHW", "OIHW", "NCHW"))
        mean = y.mean(axis=(0, 2, 3), keepdims=True)
        var = jnp.square(y - mean).mean(axis=(0, 2, 3), keepdims=True)
        y = (y - mean) * jax.lax.rsqrt(var + EPS)
        y = y * g.reshape(1, -1, 1, 1) + b.reshape(1, -1, 1, 1)
        return jnp.maximum(y, 0.0)

    return stage(stage(x, w1, g1, b1), w2, g2, b2)


if __name__ == "__main__":
    key = jax.random.PRNGKey(0)
    k_x, k_w1, k_w2, k_g1, k_b1, k_g2, k_b2 = jax.random.split(key, 7)

    N, Cin, Cout, H, W = 2, 4, 8, 16, 16

    x = jax.random.normal(k_x, (N, Cin, H, W), jnp.float32)
    # conv weights (PyTorch OIHW shape), deterministic init
    w1 = 0.1 * jax.random.normal(k_w1, (Cout, Cin, 3, 3), jnp.float32)
    w2 = 0.1 * jax.random.normal(k_w2, (Cout, Cout, 3, 3), jnp.float32)
    # BatchNorm affine params (perturbed from the gamma=1 / beta=0 defaults to
    # exercise the scale/shift path)
    g1 = 1.0 + 0.1 * jax.random.normal(k_g1, (Cout,), jnp.float32)
    b1 = 0.1 * jax.random.normal(k_b1, (Cout,), jnp.float32)
    g2 = 1.0 + 0.1 * jax.random.normal(k_g2, (Cout,), jnp.float32)
    b2 = 0.1 * jax.random.normal(k_b2, (Cout,), jnp.float32)

    out = jax.block_until_ready(double_conv(x, w1, g1, b1, w2, g2, b2))

    ref = _ref_double_conv(x, w1, g1, b1, w2, g2, b2)
    assert out.shape == (N, Cout, H, W), out.shape
    max_err = float(jnp.max(jnp.abs(out - ref)))
    # bf16 MXU operands (f32 accumulation / BN) -> loosened tolerance.
    assert jnp.allclose(out, ref, atol=3e-2, rtol=3e-2), max_err

    print("KERNEL_OK")
</pallas_src>

<mosaic_0001>
module attributes {stable_mosaic.version = 11 : i64} {
  func.func @_double_conv_kernel(%arg0: i32, %arg1: memref<2x16x64xf32, #tpu.memory_space<vmem>>, %arg2: memref<192x128xbf16, #tpu.memory_space<vmem>>, %arg3: memref<384x128xbf16, #tpu.memory_space<vmem>>, %arg4: memref<1x128xf32, #tpu.memory_space<vmem>>, %arg5: memref<1x128xf32, #tpu.memory_space<vmem>>, %arg6: memref<1x128xf32, #tpu.memory_space<vmem>>, %arg7: memref<1x128xf32, #tpu.memory_space<vmem>>, %arg8: memref<2x16x128xf32, #tpu.memory_space<vmem>>, %arg9: memref<2x16x192xf32, #tpu.memory_space<vmem>>, %arg10: memref<2x16x384xf32, #tpu.memory_space<vmem>>) attributes {dimension_semantics = [#tpu.dimension_semantics<arbitrary>], iteration_bounds = array<i64: 1>, scalar_prefetch = 0 : i64, scratch_operands = 2 : i64, tpu.core_type = #tpu.core_type<tc>, window_params = [{pipeline_mode = #tpu.pipeline_mode<synchronous>, transform_indices = @transform_0, window_bounds = array<i64: 2, 16, 64>}, {pipeline_mode = #tpu.pipeline_mode<synchronous>, transform_indices = @transform_1, window_bounds = array<i64: 192, 128>}, {pipeline_mode = #tpu.pipeline_mode<synchronous>, transform_indices = @transform_2, window_bounds = array<i64: 384, 128>}, {pipeline_mode = #tpu.pipeline_mode<synchronous>, transform_indices = @transform_3, window_bounds = array<i64: 1, 128>}, {pipeline_mode = #tpu.pipeline_mode<synchronous>, transform_indices = @transform_4, window_bounds = array<i64: 1, 128>}, {pipeline_mode = #tpu.pipeline_mode<synchronous>, transform_indices = @transform_5, window_bounds = array<i64: 1, 128>}, {pipeline_mode = #tpu.pipeline_mode<synchronous>, transform_indices = @transform_6, window_bounds = array<i64: 1, 128>}, {pipeline_mode = #tpu.pipeline_mode<synchronous>, transform_indices = @transform_7, window_bounds = array<i64: 2, 16, 128>}]} {
    %c0 = arith.constant 0 : index
    %c0_0 = arith.constant 0 : index
    %c0_1 = arith.constant 0 : index
    %0 = vector.load %arg1[%c0, %c0_0, %c0_1] : memref<2x16x64xf32, #tpu.memory_space<vmem>>, vector<2x16x64xf32>
    %cst = arith.constant 0.000000e+00 : f32
    %1 = vector.broadcast %cst : f32 to vector<2x1x64xf32>
    %c0_2 = arith.constant 0 : index
    %c0_3 = arith.constant 0 : index
    %c64 = arith.constant 64 : index
    %2 = vector.load %arg9[%c0_2, %c0_3, %c64] : memref<2x16x192xf32, #tpu.memory_space<vmem>>, vector<2x16x64xf32>
    tpu.vector_store %arg9[%c0_2, %c0_3, %c64], %0 {strides = array<i32>} : memref<2x16x192xf32, #tpu.memory_space<vmem>>, vector<2x16x64xf32>,
    %3 = vector.extract_strided_slice %0 {offsets = [0, 0, 0], sizes = [2, 15, 64], strides = [1, 1, 1]} : vector<2x16x64xf32> to vector<2x15x64xf32>
    %c0_4 = arith.constant 0 : index
    %c1 = arith.constant 1 : index
    %c0_5 = arith.constant 0 : index
    %4 = vector.load %arg9[%c0_4, %c1, %c0_5] : memref<2x16x192xf32, #tpu.memory_space<vmem>>, vector<2x15x64xf32>
    tpu.vector_store %arg9[%c0_4, %c1, %c0_5], %3 {strides = array<i32>} : memref<2x16x192xf32, #tpu.memory_space<vmem>>, vector<2x15x64xf32>,
    %c0_6 = arith.constant 0 : index
    %c0_7 = arith.constant 0 : index
    %c0_8 = arith.constant 0 : index
    %5 = vector.load %arg9[%c0_6, %c0_7, %c0_8] : memref<2x16x192xf32, #tpu.memory_space<vmem>>, vector<2x1x64xf32>
    tpu.vector_store %arg9[%c0_6, %c0_7, %c0_8], %1 {strides = array<i32>} : memref<2x16x192xf32, #tpu.memory_space<vmem>>, vector<2x1x64xf32>,
    %6 = vector.extract_strided_slice %0 {offsets = [0, 1, 0], sizes = [2, 15, 64], strides = [1, 1, 1]} : vector<2x16x64xf32> to vector<2x15x64xf32>
    %c0_9 = arith.constant 0 : index
    %c0_10 = arith.constant 0 : index
    %c128 = arith.constant 128 : index
    %7 = vector.load %arg9[%c0_9, %c0_10, %c128] : memref<2x16x192xf32, #tpu.memory_space<vmem>>, vector<2x15x64xf32>
    tpu.vector_store %arg9[%c0_9, %c0_10, %c128], %6 {strides = array<i32>} : memref<2x16x192xf32, #tpu.memory_space<vmem>>, vector<2x15x64xf32>,
    %c0_11 = arith.constant 0 : index
    %c15 = arith.constant 15 : index
    %c128_12 = arith.constant 128 : index
    %8 = vector.load %arg9[%c0_11, %c15, %c128_12] : memref<2x16x192xf32, #tpu.memory_space<vmem>>, vector<2x1x64xf32>
    tpu.vector_store %arg9[%c0_11, %c15, %c128_12], %1 {strides = array<i32>} : memref<2x16x192xf32, #tpu.memory_space<vmem>>, vector<2x1x64xf32>,
    %c0_13 = arith.constant 0 : index
    %c0_14 = arith.constant 0 : index
    %c0_15 = arith.constant 0 : index
    %9 = vector.load %arg9[%c0_13, %c0_14, %c0_15] : memref<2x16x192xf32, #tpu.memory_space<vmem>>, vector<2x16x192xf32>
    %10 = vector.shape_cast %9 : vector<2x16x192xf32> to vector<32x192xf32>
    %11 = arith.truncf %10 : vector<32x192xf32> to vector<32x192xbf16>
    %c0_16 = arith.constant 0 : index
    %c0_17 = arith.constant 0 : index
    %12 = vector.load %arg2[%c0_16, %c0_17] : memref<192x128xbf16, #tpu.memory_space<vmem>>, vector<192x128xbf16>
    %cst_18 = arith.constant dense<0.000000e+00> : vector<32x128xf32>
    %13 = tpu.matmul %11, %12, %cst_18 {dimension_numbers = #tpu.dot_dimension_numbers<[1], [0], [0], [1], [0, 0, 1, 1], [], []>} : vector<32x192xbf16>, vector<192x128xbf16>, vector<32x128xf32> -> vector<32x128xf32>
    %c0_19 = arith.constant 0 : index
    %c0_20 = arith.constant 0 : index
    %14 = vector.load %arg4[%c0_19, %c0_20] : memref<1x128xf32, #tpu.memory_space<vmem>>, vector<1x128xf32>
    %c0_21 = arith.constant 0 : index
    %c0_22 = arith.constant 0 : index
    %15 = vector.load %arg5[%c0_21, %c0_22] : memref<1x128xf32, #tpu.memory_space<vmem>>, vector<1x128xf32>
    %cst_23 = arith.constant dense<0.000000e+00> : vector<128xf32>
    %16 = vector.multi_reduction <add>, %13, %cst_23 [0] : vector<32x128xf32> to vector<128xf32>
    %17 = vector.shape_cast %16 : vector<128xf32> to vector<1x128xf32>
    %c8_i32 = arith.constant 8 : i32
    %18 = tpu.dynamic_rotate %17 by %c8_i32 dim 1 : vector<1x128xf32>, i32 -> vector<1x128xf32>
    %19 = arith.addf %17, %18 : vector<1x128xf32>
    %c16_i32 = arith.constant 16 : i32
    %20 = tpu.dynamic_rotate %19 by %c16_i32 dim 1 : vector<1x128xf32>, i32 -> vector<1x128xf32>
    %21 = arith.addf %19, %20 : vector<1x128xf32>
    %c32_i32 = arith.constant 32 : i32
    %22 = tpu.dynamic_rotate %21 by %c32_i32 dim 1 : vector<1x128xf32>, i32 -> vector<1x128xf32>
    %23 = arith.addf %21, %22 : vector<1x128xf32>
    %c64_i32 = arith.constant 64 : i32
    %24 = tpu.dynamic_rotate %23 by %c64_i32 dim 1 : vector<1x128xf32>, i32 -> vector<1x128xf32>
    %25 = arith.addf %23, %24 : vector<1x128xf32>
    %cst_24 = arith.constant 0.001953125 : f32
    %26 = vector.broadcast %cst_24 : f32 to vector<1x128xf32>
    %27 = arith.mulf %25, %26 : vector<1x128xf32>
    %28 = vector.broadcast %27 : vector<1x128xf32> to vector<32x128xf32>
    %29 = arith.subf %13, %28 : vector<32x128xf32>
    %30 = arith.mulf %29, %29 : vector<32x128xf32>
    %cst_25 = arith.constant dense<0.000000e+00> : vector<128xf32>
    %31 = vector.multi_reduction <add>, %30, %cst_25 [0] : vector<32x128xf32> to vector<128xf32>
    %32 = vector.shape_cast %31 : vector<128xf32> to vector<1x128xf32>
    %c8_i32_26 = arith.constant 8 : i32
    %33 = tpu.dynamic_rotate %32 by %c8_i32_26 dim 1 : vector<1x128xf32>, i32 -> vector<1x128xf32>
    %34 = arith.addf %32, %33 : vector<1x128xf32>
    %c16_i32_27 = arith.constant 16 : i32
    %35 = tpu.dynamic_rotate %34 by %c16_i32_27 dim 1 : vector<1x128xf32>, i32 -> vector<1x128xf32>
    %36 = arith.addf %34, %35 : vector<1x128xf32>
    %c32_i32_28 = arith.constant 32 : i32
    %37 = tpu.dynamic_rotate %36 by %c32_i32_28 dim 1 : vector<1x128xf32>, i32 -> vector<1x128xf32>
    %38 = arith.addf %36, %37 : vector<1x128xf32>
    %c64_i32_29 = arith.constant 64 : i32
    %39 = tpu.dynamic_rotate %38 by %c64_i32_29 dim 1 : vector<1x128xf32>, i32 -> vector<1x128xf32>
    %40 = arith.addf %38, %39 : vector<1x128xf32>
    %cst_30 = arith.constant 0.001953125 : f32
    %41 = vector.broadcast %cst_30 : f32 to vector<1x128xf32>
    %42 = arith.mulf %40, %41 : vector<1x128xf32>
    %cst_31 = arith.constant 9.99999974E-6 : f32
    %43 = vector.broadcast %cst_31 : f32 to vector<1x128xf32>
    %44 = arith.addf %42, %43 : vector<1x128xf32>
    %45 = math.rsqrt %44 : vector<1x128xf32>
    %46 = arith.mulf %14, %45 : vector<1x128xf32>
    %47 = vector.broadcast %46 : vector<1x128xf32> to vector<32x128xf32>
    %48 = arith.mulf %29, %47 : vector<32x128xf32>
    %49 = vector.broadcast %15 : vector<1x128xf32> to vector<32x128xf32>
    %50 = arith.addf %48, %49 : vector<32x128xf32>
    %cst_32 = arith.constant 0.000000e+00 : f32
    %51 = vector.broadcast %cst_32 : f32 to vector<32x128xf32>
    %52 = arith.maximumf %50, %51 : vector<32x128xf32>
    %53 = vector.shape_cast %52 : vector<32x128xf32> to vector<2x16x128xf32>
    %cst_33 = arith.constant 0.000000e+00 : f32
    %54 = vector.broadcast %cst_33 : f32 to vector<2x1x128xf32>
    %c0_34 = arith.constant 0 : index
    %c0_35 = arith.constant 0 : index
    %c128_36 = arith.constant 128 : index
    %55 = vector.load %arg10[%c0_34, %c0_35, %c128_36] : memref<2x16x384xf32, #tpu.memory_space<vmem>>, vector<2x16x128xf32>
    tpu.vector_store %arg10[%c0_34, %c0_35, %c128_36], %53 {strides = array<i32>} : memref<2x16x384xf32, #tpu.memory_space<vmem>>, vector<2x16x128xf32>,
    %56 = vector.extract_strided_slice %53 {offsets = [0, 0, 0], sizes = [2, 15, 128], strides = [1, 1, 1]} : vector<2x16x128xf32> to vector<2x15x128xf32>
    %c0_37 = arith.constant 0 : index
    %c1_38 = arith.constant 1 : index
    %c0_39 = arith.constant 0 : index
    %57 = vector.load %arg10[%c0_37, %c1_38, %c0_39] : memref<2x16x384xf32, #tpu.memory_space<vmem>>, vector<2x15x128xf32>
    tpu.vector_store %arg10[%c0_37, %c1_38, %c0_39], %56 {strides = array<i32>} : memref<2x16x384xf32, #tpu.memory_space<vmem>>, vector<2x15x128xf32>,
    %c0_40 = arith.constant 0 : index
    %c0_41 = arith.constant 0 : index
    %c0_42 = arith.constant 0 : index
    %58 = vector.load %arg10[%c0_40, %c0_41, %c0_42] : memref<2x16x384xf32, #tpu.memory_space<vmem>>, vector<2x1x128xf32>
    tpu.vector_store %arg10[%c0_40, %c0_41, %c0_42], %54 {strides = array<i32>} : memref<2x16x384xf32, #tpu.memory_space<vmem>>, vector<2x1x128xf32>,
    %59 = vector.extract_strided_slice %53 {offsets = [0, 1, 0], sizes = [2, 15, 128], strides = [1, 1, 1]} : vector<2x16x128xf32> to vector<2x15x128xf32>
    %c0_43 = arith.constant 0 : index
    %c0_44 = arith.constant 0 : index
    %c256 = arith.constant 256 : index
    %60 = vector.load %arg10[%c0_43, %c0_44, %c256] : memref<2x16x384xf32, #tpu.memory_space<vmem>>, vector<2x15x128xf32>
    tpu.vector_store %arg10[%c0_43, %c0_44, %c256], %59 {strides = array<i32>} : memref<2x16x384xf32, #tpu.memory_space<vmem>>, vector<2x15x128xf32>,
    %c0_45 = arith.constant 0 : index
    %c15_46 = arith.constant 15 : index
    %c256_47 = arith.constant 256 : index
    %61 = vector.load %arg10[%c0_45, %c15_46, %c256_47] : memref<2x16x384xf32, #tpu.memory_space<vmem>>, vector<2x1x128xf32>
    tpu.vector_store %arg10[%c0_45, %c15_46, %c256_47], %54 {strides = array<i32>} : memref<2x16x384xf32, #tpu.memory_space<vmem>>, vector<2x1x128xf32>,
    %c0_48 = arith.constant 0 : index
    %c0_49 = arith.constant 0 : index
    %c0_50 = arith.constant 0 : index
    %62 = vector.load %arg10[%c0_48, %c0_49, %c0_50] : memref<2x16x384xf32, #tpu.memory_space<vmem>>, vector<2x16x384xf32>
    %63 = vector.shape_cast %62 : vector<2x16x384xf32> to vector<32x384xf32>
    %64 = arith.truncf %63 : vector<32x384xf32> to vector<32x384xbf16>
    %c0_51 = arith.constant 0 : index
    %c0_52 = arith.constant 0 : index
    %65 = vector.load %arg3[%c0_51, %c0_52] : memref<384x128xbf16, #tpu.memory_space<vmem>>, vector<384x128xbf16>
    %cst_53 = arith.constant dense<0.000000e+00> : vector<32x128xf32>
    %66 = tpu.matmul %64, %65, %cst_53 {dimension_numbers = #tpu.dot_dimension_numbers<[1], [0], [0], [1], [0, 0, 1, 1], [], []>} : vector<32x384xbf16>, vector<384x128xbf16>, vector<32x128xf32> -> vector<32x128xf32>
    %c0_54 = arith.constant 0 : index
    %c0_55 = arith.constant 0 : index
    %67 = vector.load %arg6[%c0_54, %c0_55] : memref<1x128xf32, #tpu.memory_space<vmem>>, vector<1x128xf32>
    %c0_56 = arith.constant 0 : index
    %c0_57 = arith.constant 0 : index
    %68 = vector.load %arg7[%c0_56, %c0_57] : memref<1x128xf32, #tpu.memory_space<vmem>>, vector<1x128xf32>
    %cst_58 = arith.constant dense<0.000000e+00> : vector<128xf32>
    %69 = vector.multi_reduction <add>, %66, %cst_58 [0] : vector<32x128xf32> to vector<128xf32>
    %70 = vector.shape_cast %69 : vector<128xf32> to vector<1x128xf32>
    %c8_i32_59 = arith.constant 8 : i32
    %71 = tpu.dynamic_rotate %70 by %c8_i32_59 dim 1 : vector<1x128xf32>, i32 -> vector<1x128xf32>
    %72 = arith.addf %70, %71 : vector<1x128xf32>
    %c16_i32_60 = arith.constant 16 : i32
    %73 = tpu.dynamic_rotate %72 by %c16_i32_60 dim 1 : vector<1x128xf32>, i32 -> vector<1x128xf32>
    %74 = arith.addf %72, %73 : vector<1x128xf32>
    %c32_i32_61 = arith.constant 32 : i32
    %75 = tpu.dynamic_rotate %74 by %c32_i32_61 dim 1 : vector<1x128xf32>, i32 -> vector<1x128xf32>
    %76 = arith.addf %74, %75 : vector<1x128xf32>
    %c64_i32_62 = arith.constant 64 : i32
    %77 = tpu.dynamic_rotate %76 by %c64_i32_62 dim 1 : vector<1x128xf32>, i32 -> vector<1x128xf32>
    %78 = arith.addf %76, %77 : vector<1x128xf32>
    %cst_63 = arith.constant 0.001953125 : f32
    %79 = vector.broadcast %cst_63 : f32 to vector<1x128xf32>
    %80 = arith.mulf %78, %79 : vector<1x128xf32>
    %81 = vector.broadcast %80 : vector<1x128xf32> to vector<32x128xf32>
    %82 = arith.subf %66, %81 : vector<32x128xf32>
    %83 = arith.mulf %82, %82 : vector<32x128xf32>
    %cst_64 = arith.constant dense<0.000000e+00> : vector<128xf32>
    %84 = vector.multi_reduction <add>, %83, %cst_64 [0] : vector<32x128xf32> to vector<128xf32>
    %85 = vector.shape_cast %84 : vector<128xf32> to vector<1x128xf32>
    %c8_i32_65 = arith.constant 8 : i32
    %86 = tpu.dynamic_rotate %85 by %c8_i32_65 dim 1 : vector<1x128xf32>, i32 -> vector<1x128xf32>
    %87 = arith.addf %85, %86 : vector<1x128xf32>
    %c16_i32_66 = arith.constant 16 : i32
    %88 = tpu.dynamic_rotate %87 by %c16_i32_66 dim 1 : vector<1x128xf32>, i32 -> vector<1x128xf32>
    %89 = arith.addf %87, %88 : vector<1x128xf32>
    %c32_i32_67 = arith.constant 32 : i32
    %90 = tpu.dynamic_rotate %89 by %c32_i32_67 dim 1 : vector<1x128xf32>, i32 -> vector<1x128xf32>
    %91 = arith.addf %89, %90 : vector<1x128xf32>
    %c64_i32_68 = arith.constant 64 : i32
    %92 = tpu.dynamic_rotate %91 by %c64_i32_68 dim 1 : vector<1x128xf32>, i32 -> vector<1x128xf32>
    %93 = arith.addf %91, %92 : vector<1x128xf32>
    %cst_69 = arith.constant 0.001953125 : f32
    %94 = vector.broadcast %cst_69 : f32 to vector<1x128xf32>
    %95 = arith.mulf %93, %94 : vector<1x128xf32>
    %cst_70 = arith.constant 9.99999974E-6 : f32
    %96 = vector.broadcast %cst_70 : f32 to vector<1x128xf32>
    %97 = arith.addf %95, %96 : vector<1x128xf32>
    %98 = math.rsqrt %97 : vector<1x128xf32>
    %99 = arith.mulf %67, %98 : vector<1x128xf32>
    %100 = vector.broadcast %99 : vector<1x128xf32> to vector<32x128xf32>
    %101 = arith.mulf %82, %100 : vector<32x128xf32>
    %102 = vector.broadcast %68 : vector<1x128xf32> to vector<32x128xf32>
    %103 = arith.addf %101, %102 : vector<32x128xf32>
    %cst_71 = arith.constant 0.000000e+00 : f32
    %104 = vector.broadcast %cst_71 : f32 to vector<32x128xf32>
    %105 = arith.maximumf %103, %104 : vector<32x128xf32>
    %106 = vector.shape_cast %105 : vector<32x128xf32> to vector<2x16x128xf32>
    %c0_72 = arith.constant 0 : index
    %c0_73 = arith.constant 0 : index
    %c0_74 = arith.constant 0 : index
    %107 = vector.load %arg8[%c0_72, %c0_73, %c0_74] : memref<2x16x128xf32, #tpu.memory_space<vmem>>, vector<2x16x128xf32>
    tpu.vector_store %arg8[%c0_72, %c0_73, %c0_74], %106 {strides = array<i32>} : memref<2x16x128xf32, #tpu.memory_space<vmem>>, vector<2x16x128xf32>,
    return
  }
  func.func @transform_0(%arg0: i32) -> (i32, i32, i32) {
    %c0_i32 = arith.constant 0 : i32
    %c0_i32_0 = arith.constant 0 : i32
    %c0_i32_1 = arith.constant 0 : i32
    %c0_i32_2 = arith.constant 0 : i32
    return %c0_i32, %c0_i32_0, %c0_i32_1 : i32, i32, i32
  }
  func.func @transform_1(%arg0: i32) -> (i32, i32) {
    %c0_i32 = arith.constant 0 : i32
    %c0_i32_0 = arith.constant 0 : i32
    %c0_i32_1 = arith.constant 0 : i32
    return %c0_i32, %c0_i32_0 : i32, i32
  }
  func.func @transform_2(%arg0: i32) -> (i32, i32) {
    %c0_i32 = arith.constant 0 : i32
    %c0_i32_0 = arith.constant 0 : i32
    %c0_i32_1 = arith.constant 0 : i32
    return %c0_i32, %c0_i32_0 : i32, i32
  }
  func.func @transform_3(%arg0: i32) -> (i32, i32) {
    %c0_i32 = arith.constant 0 : i32
    %c0_i32_0 = arith.constant 0 : i32
    %c0_i32_1 = arith.constant 0 : i32
    return %c0_i32, %c0_i32_0 : i32, i32
  }
  func.func @transform_4(%arg0: i32) -> (i32, i32) {
    %c0_i32 = arith.constant 0 : i32
    %c0_i32_0 = arith.constant 0 : i32
    %c0_i32_1 = arith.constant 0 : i32
    return %c0_i32, %c0_i32_0 : i32, i32
  }
  func.func @transform_5(%arg0: i32) -> (i32, i32) {
    %c0_i32 = arith.constant 0 : i32
    %c0_i32_0 = arith.constant 0 : i32
    %c0_i32_1 = arith.constant 0 : i32
    return %c0_i32, %c0_i32_0 : i32, i32
  }
  func.func @transform_6(%arg0: i32) -> (i32, i32) {
    %c0_i32 = arith.constant 0 : i32
    %c0_i32_0 = arith.constant 0 : i32
    %c0_i32_1 = arith.constant 0 : i32
    return %c0_i32, %c0_i32_0 : i32, i32
  }
  func.func @transform_7(%arg0: i32) -> (i32, i32, i32) {
    %c0_i32 = arith.constant 0 : i32
    %c0_i32_0 = arith.constant 0 : i32
    %c0_i32_1 = arith.constant 0 : i32
    %c0_i32_2 = arith.constant 0 : i32
    return %c0_i32, %c0_i32_0, %c0_i32_1 : i32, i32, i32
  }
}

</mosaic_0001>

<bundles_post_ra>
// kernel: tile.23
= control target key start
LH: loop header
LB: loop body
LE: loop exit
PB: predicated region body
PF: predicated region fallthrough
CT: control target
= control target key end

     0   :  { %s28_s0 = inlined_call_operand.vmem [shape: f32[8], index: 0, kind: input, shape index: {}]   ;;  %s29_s1 = inlined_call_operand.vmem [shape: f32[16,8], index: 1, kind: output, shape index: {}]  }
   0x1   :  { %v4_v0 = vld [vmem:[%s28_s0] ss:$0 sm:$0xff] }
   0x2   :  { %5 = vst [vmem:[%s29_s1] sm:$0xff] %v4_v0  ;;  %8 = vst [vmem:[%s29_s1 + $0x8] sm:$0xff] %v4_v0 }

// kernel: tile.24
= control target key start
LH: loop header
LB: loop body
LE: loop exit
PB: predicated region body
PF: predicated region fallthrough
CT: control target
= control target key end

     0   :  { %s131_s10 = smov 120   ;;  %s132_s11 = smov 104   ;;  %vm3_vm0 = vcmask 64512   ;;  %vm9_vm1 = vcmask 1048512   ;;  %vm15_vm2 = vcmask 982912   ;;  %vm21_vm3 = vcmask 917312   ;;  %s207_s0 = inlined_call_operand.vmem [shape: f32[16,8], index: 0, kind: input, shape index: {}]   ;;  %s208_s1 = inlined_call_operand.vmem [shape: f32[1,128], index: 1, kind: output, shape index: {}]  }
   0x1   :  { %v101_v0 = vld [vmem:[%s207_s0 + $0xf] sm:$0x1]   ;;  %v103_v1 = vld [vmem:[%s207_s0 + $0xd] sm:$0x1]   ;;  %v102_v2 = vld [vmem:[%s207_s0 + $0xe] sm:$0x1]  }
   0x2   :  { %7 = vrot.lane.b32.xlu0 %v101_v0, %s131_s10  ;;  %19 = vrot.lane.b32.xlu1 %v103_v1, %s132_s11  ;;  %v104_v3 = vld [vmem:[%s207_s0 + $0xc] sm:$0x1]   ;;  %s133_s16 = smov 112   ;;  %s134_s17 = smov 96   ;;  %v105_v4 = vld [vmem:[%s207_s0 + $0xb] sm:$0x1]  }
   0x3   :  { %v106_v5 = vld [vmem:[%s207_s0 + $0xa] sm:$0x1]   ;;  %v2_v6 = vld [vmem:[%s207_s0] sm:$0x1]   ;;  %s135_s24 = smov 88   ;;  %s136_s25 = smov 80  }
   0x4   :  { %4 = vst.msk [vmem:[#allocation0] sm:$0x1] %vm3_vm0, %v2_v6   ;;  %v107_v7 = vld [vmem:[%s207_s0 + $0x9] sm:$0x1]   ;;  %v108_v8 = vld [vmem:[%s207_s0 + $0x8] sm:$0x1]  }
   0x5   :  { %s137_s30 = smov 72   ;;  %s138_s2 = smov 64   ;;  %v109_v9 = vld [vmem:[%s207_s0 + $0x7] sm:$0x1]   ;;  %v110_v10 = vld [vmem:[%s207_s0 + $0x6] sm:$0x1]  }
   0x6   :  { %13 = vrot.lane.b32.xlu0 %v102_v2, %s133_s16  ;;  %25 = vrot.lane.b32.xlu1 %v104_v3, %s134_s17  ;;  %s139_s7 = smov 56   ;;  %s140_s8 = smov 48   ;;  %v111_v11 = vld [vmem:[%s207_s0 + $0x5] sm:$0x1]   ;;  %v112_v12 = vld [vmem:[%s207_s0 + $0x4] sm:$0x1]  }
   0x7   :  { %s141_s13 = smov 40   ;;  %s142_s14 = smov 32   ;;  %v113_v13 = vld [vmem:[%s207_s0 + $0x3] sm:$0x1]   ;;  %v114_v14 = vld [vmem:[%s207_s0 + $0x2] sm:$0x1]  }
   0x8   :  { %s143_s19 = smov 24   ;;  %s144_s20 = smov 16   ;;  %v115_v15 = vld [vmem:[%s207_s0 + $0x1] sm:$0x1]   ;;  %vm27_vm4 = vcmask 851712   ;;  %vm33_vm5 = vcmask 786112  }
   0x9   :  { %s145_s0 = smov 8   ;;  %vm39_vm6 = vcmask 720512   ;;  %vm45_vm7 = vcmask 654912   ;;  %vm51_vm8 = vcmask 589312   ;;  %vm57_vm9 = vcmask 523712  }
   0xa   :  { %31 = vrot.lane.b32.xlu0 %v105_v4, %s135_s24  ;;  %37 = vrot.lane.b32.xlu1 %v106_v5, %s136_s25  ;;  %vm63_vm10 = vcmask 458112   ;;  %vm69_vm11 = vcmask 392512   ;;  %vm75_vm12 = vcmask 326912   ;;  %vm81_vm13 = vcmask 261312  }
   0xb   :  { %vm87_vm14 = vcmask 195712   ;;  %vm93_vm15 = vcmask 130112  }
   0xe   :  { %43 = vrot.lane.b32.xlu0 %v107_v7, %s137_s30  ;;  %49 = vrot.lane.b32.xlu1 %v108_v8, %s138_s2 }
  0x12   :  { %55 = vrot.lane.b32.xlu0 %v109_v9, %s139_s7  ;;  %61 = vrot.lane.b32.xlu1 %v110_v10, %s140_s8 }
  0x16   :  { %67 = vrot.lane.b32.xlu0 %v111_v11, %s141_s13  ;;  %73 = vrot.lane.b32.xlu1 %v112_v12, %s142_s14 }
  0x1a   :  { %79 = vrot.lane.b32.xlu0 %v113_v13, %s143_s19  ;;  %85 = vrot.lane.b32.xlu1 %v114_v14, %s144_s20 }
  0x1e   :  { %91 = vrot.lane.b32.xlu0 %v115_v15, %s145_s0 }
  0x74   :  { %v8_v16 = vpop.permute.xlu0 %7   ;;  %v20_v17 = vpop.permute.xlu1 %19  }
  0x75   :  { %10 = vst.msk [vmem:[#allocation0] sm:$0x1] %vm9_vm1, %v8_v16  }
  0x78   :  { %v14_v18 = vpop.permute.xlu0 %13   ;;  %v26_v19 = vpop.permute.xlu1 %25  }
  0x79   :  { %16 = vst.msk [vmem:[#allocation0] sm:$0x1] %vm15_vm2, %v14_v18  }
  0x7a   :  { %22 = vst.msk [vmem:[#allocation0] sm:$0x1] %vm21_vm3, %v20_v17  }
  0x7b   :  { %28 = vst.msk [vmem:[#allocation0] sm:$0x1] %vm27_vm4, %v26_v19  }
  0x7c   :  { %v32_v20 = vpop.permute.xlu0 %31   ;;  %v38_v21 = vpop.permute.xlu1 %37  }
  0x7d   :  { %34 = vst.msk [vmem:[#allocation0] sm:$0x1] %vm33_vm5, %v32_v20  }
  0x7e   :  { %40 = vst.msk [vmem:[#allocation0] sm:$0x1] %vm39_vm6, %v38_v21  }
  0x80   :  { %v44_v22 = vpop.permute.xlu0 %43   ;;  %v50_v23 = vpop.permute.xlu1 %49  }
  0x81   :  { %46 = vst.msk [vmem:[#allocation0] sm:$0x1] %vm45_vm7, %v44_v22  }
  0x82   :  { %52 = vst.msk [vmem:[#allocation0] sm:$0x1] %vm51_vm8, %v50_v23  }
  0x84   :  { %v56_v24 = vpop.permute.xlu0 %55   ;;  %v62_v25 = vpop.permute.xlu1 %61  }
  0x85   :  { %58 = vst.msk [vmem:[#allocation0] sm:$0x1] %vm57_vm9, %v56_v24  }
  0x86   :  { %64 = vst.msk [vmem:[#allocation0] sm:$0x1] %vm63_vm10, %v62_v25  }
  0x88   :  { %v68_v26 = vpop.permute.xlu0 %67   ;;  %v74_v27 = vpop.permute.xlu1 %73  }
  0x89   :  { %70 = vst.msk [vmem:[#allocation0] sm:$0x1] %vm69_vm11, %v68_v26  }
  0x8a   :  { %76 = vst.msk [vmem:[#allocation0] sm:$0x1] %vm75_vm12, %v74_v27  }
  0x8c   :  { %v80_v28 = vpop.permute.xlu0 %79   ;;  %v86_v29 = vpop.permute.xlu1 %85  }
  0x8d   :  { %82 = vst.msk [vmem:[#allocation0] sm:$0x1] %vm81_vm13, %v80_v28  }
  0x8e   :  { %88 = vst.msk [vmem:[#allocation0] sm:$0x1] %vm87_vm14, %v86_v29  }
  0x90   :  { %v92_v30 = vpop.permute.xlu0 %91  }
  0x91   :  { %94 = vst.msk [vmem:[#allocation0] sm:$0x1] %vm93_vm15, %v92_v30  }
  0x98   :  { %v98_v31 = vld [vmem:[#allocation0] sm:$0x1] }
  0x99   :  { %100 = vst [vmem:[%s208_s1] sm:$0x1] %v98_v31 }

// kernel: double_conv.1
= control target key start
LH: loop header
LB: loop body
LE: loop exit
PB: predicated region body
PF: predicated region fallthrough
CT: control target
= control target key end

     0   :  { %vm72_vm0 = vcmask 1046528   ;;  %vm84_vm1 = vcmask 522240   ;;  %v923_v3 = vmov 0   ;;  %vm69_vm2 = vcmask 516096   ;;  %s924_s30 = smov 64   ;;  %s927_s11 = smov 16   ;;  %s1213_s0 = inlined_call_operand.vmem [shape: f32[2,16,64], index: 0, kind: input, shape index: {}]   ;;  %s1214_s1 = inlined_call_operand.vmem [shape: bf16[192,128], index: 1, kind: input, shape index: {}]   ;;  %s1215_s2 = inlined_call_operand.vmem [shape: bf16[384,128], index: 2, kind: input, shape index: {}]   ;;  %s1216_s3 = inlined_call_operand.vmem [shape: f32[1,128], index: 3, kind: input, shape index: {}]   ;;  %s1217_s4 = inlined_call_operand.vmem [shape: f32[1,128], index: 4, kind: input, shape index: {}]   ;;  %s1218_s5 = inlined_call_operand.vmem [shape: f32[1,128], index: 5, kind: input, shape index: {}]   ;;  %s1219_s6 = inlined_call_operand.vmem [shape: f32[1,128], index: 6, kind: input, shape index: {}]   ;;  %s1220_s7 = inlined_call_operand.vmem [shape: f32[2,16,128], index: 7, kind: output, shape index: {}]  }
   0x1   :  { %v972_v0 = vld [vmem:[%s1213_s0] sm:$0xff]  ;;  %v28_v1 = vld [vmem:[%s1213_s0 + $0x8] sm:$0xff]  ;;  %v980_v2 = vld [vmem:[%s1213_s0 + $0x10] sm:$0xff]  ;;  %204 = vmatprep.subr.bf16.mxu0 %v923_v3  ;;  %v925_v10 = vmov 0.0   ;;  %vm52_vm3 = vcmask 1040384   ;;  %vm65_vm4 = vcmask 523264  }
   0x2   :  { %35 = vrot.lane.b32.xlu0 %v972_v0, %s924_s30  ;;  %v53_v4 = vrot.slane %v972_v0, 7  ;;  %v73_v5 = vrot.slane %v972_v0, 1  ;;  %v54_v6 = vrot.slane %v28_v1, 7  ;;  %v74_v7 = vrot.slane %v28_v1, 1  ;;  %39 = vrot.lane.b32.xlu1 %v980_v2, %s924_s30  ;;  %v30_v8 = vld [vmem:[%s1213_s0 + $0x18] sm:$0xff]  ;;  %v883_v9 = vld [vmem:[%s1214_s1] sm:$0xff]  }
   0x3   :  { %88 = vst.msk [vmem:[#allocation2 + $0x1f] sm:$0x1] %vm69_vm2, %v925_v10  ;;  %89 = vst.msk [vmem:[#allocation2 + $0x3f] sm:$0x1] %vm69_vm2, %v925_v10  ;;  %v56_v11 = vrot.slane %v980_v2, 7  ;;  %v76_v12 = vrot.slane %v980_v2, 1  ;;  %205 = vmatpush1.bf16.msra.mxu0 %v883_v9 }
   0x4   :  { %360 = vst [vmem:[#allocation3] sm:$0x1] %v925_v10  ;;  %361 = vst [vmem:[#allocation3 + $0x30] sm:$0x1] %v925_v10  ;;  %v57_v13 = vrot.slane %v30_v8, 7  ;;  %v77_v14 = vrot.slane %v30_v8, 1  ;;  %v75_v15 = vsel %vm72_vm0, %v73_v5, %v74_v7  ;;  %206 = vmatprep.subr.bf16.mxu0 %v923_v3  ;;  %v55_v18 = vsel %vm52_vm3, %v53_v4, %v54_v6 }
   0x5   :  { %376 = vst [vmem:[#allocation3 + $0x2f] sm:$0x1] %v925_v10  ;;  %377 = vst [vmem:[#allocation3 + $0x5f] sm:$0x1] %v925_v10  ;;  %v884_v17 = vld [vmem:[%s1214_s1 + $0x8] sm:$0xff]   ;;  %v885_v20 = vld [vmem:[%s1214_s1 + $0x10] sm:$0xff]   ;;  %v277_v5 = vlaneseq }
   0x6   :  { %85 = vst.msk [vmem:[#allocation2 + $0x18] sm:$0x7f] %vm84_vm1, %v74_v7  ;;  %87 = vst.msk [vmem:[#allocation2 + $0x38] sm:$0x7f] %vm84_vm1, %v77_v14  ;;  %v78_v16 = vsel %vm72_vm0, %v76_v12, %v77_v14  ;;  %37 = vrot.lane.b32.xlu0 %v28_v1, %s924_s30  ;;  %41 = vrot.lane.b32.xlu1 %v30_v8, %s924_s30  ;;  %v58_v19 = vsel %vm52_vm3, %v56_v11, %v57_v13  ;;  %v886_v21 = vld [vmem:[%s1214_s1 + $0x18] sm:$0xff]   ;;  %v887_v23 = vld [vmem:[%s1214_s1 + $0x20] sm:$0xff]  }
   0x7   :  { %86 = vst.msk [vmem:[#allocation2 + $0x28] sm:$0xff] %vm65_vm4, %v78_v16  ;;  %83 = vst.msk [vmem:[#allocation2 + $0x8] sm:$0xff] %vm65_vm4, %v75_v15  ;;  %207 = vmatpush1.bf16.msra.mxu0 %v884_v17  ;;  %v888_v26 = vld [vmem:[%s1214_s1 + $0x28] sm:$0xff]   ;;  %v889_v27 = vld [vmem:[%s1214_s1 + $0x30] sm:$0xff]   ;;  %vm47_vm5 = vcmask 1048064   ;;  %vm63_vm6 = vcmask 523265  }
   0x8   :  { %208 = vmatprep.subr.bf16.mxu0 %v923_v3  ;;  %v890_v28 = vld [vmem:[%s1214_s1 + $0x38] sm:$0xff]   ;;  %v891_v29 = vld [vmem:[%s1214_s1 + $0x40] sm:$0xff]   ;;  %v892_v30 = vld [vmem:[%s1214_s1 + $0x48] sm:$0xff]   ;;  %s928_s0 = smov 32   ;;  %v278_v6 = vshrl.u32 %v277_v5, 7 }
   0x9   :  { %v893_v31 = vld [vmem:[%s1214_s1 + $0x50] sm:$0xff]   ;;  %v894_v32 = vld [vmem:[%s1214_s1 + $0x58] sm:$0xff]   ;;  %s926_s1 = smov 8  }
   0xa   :  { %v1075_v8 = vsub.s32 0, %v278_v6 }
   0xb   :  { %209 = vmatpush1.bf16.msra.mxu0 %v885_v20 }
   0xc   :  { %210 = vmatprep.subr.bf16.mxu0 %v923_v3 }
   0xd   :  { %v93_v24 = vld [vmem:[#allocation2 + $0x18] sm:$0xff] }
   0xe   :  { %v91_v22 = vld [vmem:[#allocation2 + $0x8] sm:$0xff]  ;;  %v97_v38 = vld [vmem:[#allocation2 + $0x38] sm:$0xff] }
   0xf   :  { %211 = vmatpush1.bf16.msra.mxu0 %v886_v21  ;;  %v99_v25 = vpack.c.bf16 %v93_v24, %v91_v22  ;;  %v95_v37 = vld [vmem:[#allocation2 + $0x28] sm:$0xff] }
  0x10   :  { %212 = vmatprep.subr.bf16.mxu0 %v923_v3  ;;  %v101_v41 = vpack.c.bf16 %v97_v38, %v95_v37  ;;  %v898_v37 = vld [vmem:[%s1215_s2 + $0x8] sm:$0xff]  }
  0x11   :  { %791 = vmatprep.mubr.msk.bf16.mxu0 %vm65_vm4, %v99_v25 }
  0x13   :  { %213 = vmatpush1.bf16.msra.mxu0 %v887_v23 }
  0x14   :  { %214 = vmatprep.subr.bf16.mxu0 %v923_v3 }
  0x17   :  { %215 = vmatpush1.bf16.msra.mxu0 %v888_v26 }
  0x18   :  { %216 = vmatprep.subr.bf16.mxu0 %v923_v3 }
  0x1b   :  { %217 = vmatpush1.bf16.msra.mxu0 %v889_v27 }
  0x1c   :  { %218 = vmatprep.subr.bf16.mxu0 %v923_v3 }
  0x1f   :  { %219 = vmatpush1.bf16.msra.mxu0 %v890_v28 }
  0x20   :  { %220 = vmatprep.subr.bf16.mxu0 %v923_v3 }
  0x23   :  { %221 = vmatpush1.bf16.msra.mxu0 %v891_v29 }
  0x24   :  { %222 = vmatprep.subr.bf16.mxu0 %v923_v3 }
  0x27   :  { %223 = vmatpush1.bf16.msra.mxu0 %v892_v30 }
  0x28   :  { %224 = vmatprep.subr.bf16.mxu0 %v923_v3 }
  0x2b   :  { %225 = vmatpush1.bf16.msra.mxu0 %v893_v31 }
  0x2c   :  { %226 = vmatprep.subr.bf16.mxu0 %v923_v3 }
  0x2f   :  { %227 = vmatpush1.bf16.msra.mxu0 %v894_v32 }
  0x74   :  { %v36_v33 = vpop.permute.xlu0 %35  ;;  %v40_v34 = vpop.permute.xlu1 %39 }
  0x75   :  { %48 = vst.msk [vmem:[#allocation2] sm:$0xff] %vm47_vm5, %v36_v33  ;;  %50 = vst.msk [vmem:[#allocation2 + $0x20] sm:$0xff] %vm47_vm5, %v40_v34  ;;  %v895_v33 = vld [vmem:[%s1215_s2 + $0x40] sm:$0xff]  }
  0x76   :  { %64 = vst.msk [vmem:[#allocation2] sm:$0xfe] %vm63_vm6, %v53_v4  ;;  %67 = vst.msk [vmem:[#allocation2 + $0x20] sm:$0xfe] %vm63_vm6, %v56_v11  ;;  %v896_v34 = vld [vmem:[%s1215_s2] sm:$0xff]   ;;  %819 = vmatprep.subr.bf16.mxu1 %v895_v33 }
  0x77   :  { %70 = vst.msk [vmem:[#allocation2] sm:$0x1] %vm69_vm2, %v925_v10  ;;  %71 = vst.msk [vmem:[#allocation2 + $0x20] sm:$0x1] %vm69_vm2, %v925_v10  ;;  %820 = vmatpush3.bf16.msra.mxu1 %v896_v34  ;;  %v915_v33 = vld [vmem:[%s1215_s2 + $0xa0] sm:$0xff]   ;;  %v916_v34 = vld [vmem:[%s1215_s2 + $0xa8] sm:$0xff]  }
  0x78   :  { %v38_v35 = vpop.permute.xlu0 %37  ;;  %v42_v36 = vpop.permute.xlu1 %41 }
  0x79   :  { %49 = vst.msk [vmem:[#allocation2 + $0x10] sm:$0xff] %vm47_vm5, %v38_v35  ;;  %51 = vst.msk [vmem:[#allocation2 + $0x30] sm:$0xff] %vm47_vm5, %v42_v36  ;;  %v897_v35 = vld [vmem:[%s1215_s2 + $0x48] sm:$0xff]  }
  0x7a   :  { %66 = vst.msk [vmem:[#allocation2 + $0x10] sm:$0xff] %vm65_vm4, %v55_v18  ;;  %68 = vst.msk [vmem:[#allocation2 + $0x30] sm:$0xff] %vm65_vm4, %v58_v19  ;;  %821 = vmatprep.subr.bf16.mxu1 %v897_v35  ;;  %v917_v35 = vld [vmem:[%s1215_s2 + $0xb0] sm:$0xff]  }
  0x7b   :  { %822 = vmatpush3.bf16.msra.mxu1 %v898_v37 }
  0x7e   :  { %v90_v39 = vld [vmem:[#allocation2] sm:$0xff] }
  0x7f   :  { %v94_v43 = vld [vmem:[#allocation2 + $0x20] sm:$0xff] }
  0x81   :  { %v92_v40 = vld [vmem:[#allocation2 + $0x10] sm:$0xff] }
  0x82   :  { %v98_v42 = vpack.c.bf16 %v92_v40, %v90_v39  ;;  %v96_v44 = vld [vmem:[#allocation2 + $0x30] sm:$0xff] }
  0x83   :  { %v100_v45 = vpack.c.bf16 %v96_v44, %v94_v43  ;;  %v899_v39 = vld [vmem:[%s1215_s2 + $0x50] sm:$0xff]   ;;  %v903_v43 = vld [vmem:[%s1215_s2 + $0x60] sm:$0xff]  }
  0x84   :  { %237 = vmatmul.mubr.bf16.vlgmr.msra.gmra.mrb[0].mxu0 %v98_v42  ;;  %v900_v40 = vld [vmem:[%s1215_s2 + $0x10] sm:$0xff]   ;;  %823 = vmatprep.subr.bf16.mxu1 %v899_v39  ;;  %v902_v42 = vld [vmem:[%s1215_s2 + $0x18] sm:$0xff]   ;;  %v904_v44 = vld [vmem:[%s1215_s2 + $0x20] sm:$0xff]  }
  0x85   :  { %792 = vmatprep.mubr.msk.bf16.mxu0 %vm65_vm4, %v101_v41  ;;  %824 = vmatpush3.bf16.msra.mxu1 %v900_v40  ;;  %v901_v41 = vld [vmem:[%s1215_s2 + $0x58] sm:$0xff]  }
  0x86   :  { %825 = vmatprep.subr.bf16.mxu1 %v901_v41 }
  0x89   :  { %826 = vmatpush3.bf16.msra.mxu1 %v902_v42 }
  0x8a   :  { %827 = vmatprep.subr.bf16.mxu1 %v903_v43 }
  0x8c   :  { %245 = vmatmul.mubr.bf16.gmra.mrb[4].mxu0 %v100_v45  ;;  %v905_v45 = vld [vmem:[%s1215_s2 + $0x68] sm:$0xff]  }
  0x8d   :  { %828 = vmatpush3.bf16.msra.mxu1 %v904_v44 }
  0x8e   :  { %829 = vmatprep.subr.bf16.mxu1 %v905_v45 }
 0x157   :  { %v238_v46 = vpop.f32.mrb[0].mxu0 }
 0x158   :  { %v240_v47 = vpop.f32.mrb[1].mxu0 }
 0x159   :  { %v241_v48 = vpop.f32.mrb[2].mxu0  ;;  %v907_v47 = vld [vmem:[%s1215_s2 + $0x70] sm:$0xff]  }
 0x15a   :  { %v255_v49 = vadd.f32 %v241_v48, %v238_v46  ;;  %v243_v50 = vpop.f32.mrb[3].mxu0 }
 0x15b   :  { %v910_v50 = vld [vmem:[%s1215_s2 + $0x38] sm:$0xff]  }
 0x15f   :  { %v246_v51 = vpop.f32.mrb[4].mxu0 }
 0x160   :  { %v256_v52 = vadd.f32 %v255_v49, %v246_v51  ;;  %v248_v53 = vpop.f32.mrb[5].mxu0  ;;  %v909_v49 = vld [vmem:[%s1215_s2 + $0x78] sm:$0xff]  }
 0x161   :  { %v249_v54 = vpop.f32.mrb[6].mxu0 }
 0x162   :  { %v257_v55 = vadd.f32 %v256_v52, %v249_v54  ;;  %v251_v56 = vpop.f32.mrb[7].mxu0 }
 0x163   :  { %v253_v56 = vld [vmem:[%s1216_s3] sm:$0x1] }
 0x164   :  { %v258_v57 = vrot.slane %v257_v55, 4 }
 0x166   :  { %v259_v58 = vadd.f32 %v258_v57, %v257_v55 }
 0x168   :  { %v260_v59 = vrot.slane %v259_v58, 2 }
 0x16a   :  { %v261_v60 = vadd.f32 %v260_v59, %v259_v58 }
 0x16c   :  { %v262_v61 = vrot.slane %v261_v60, 1 }
 0x16e   :  { %v263_v62 = vadd.f32 %v262_v61, %v261_v60  ;;  %v793_v60 = vld [vmem:[%s1217_s4] ss:$0 sm:$0xff] }
 0x170   :  { %264 = vrot.lane.b32.xlu0 %v263_v62, %s926_s1 }
 0x1e2   :  { %v265_v63 = vpop.permute.xlu0 %264 }
 0x1e3   :  { %v266_v0 = vadd.f32 %v265_v63, %v263_v62 }
 0x1e5   :  { %267 = vrot.lane.b32.xlu1 %v266_v0, %s927_s11 }
 0x257   :  { %v268_v1 = vpop.permute.xlu1 %267 }
 0x258   :  { %v269_v2 = vadd.f32 %v268_v1, %v266_v0 }
 0x25a   :  { %270 = vrot.lane.b32.xlu0 %v269_v2, %s928_s0 }
 0x2cc   :  { %v271_v3 = vpop.permute.xlu0 %270 }
 0x2cd   :  { %v272_v4 = vadd.f32 %v271_v3, %v269_v2 }
 0x2cf   :  { %273 = vrot.lane.b32.xlu1 %v272_v4, %s924_s30 }
 0x341   :  { %v274_v7 = vpop.permute.xlu1 %273 }
 0x342   :  { %v275_v9 = vadd.f32 %v274_v7, %v272_v4 }
 0x344   :  { %v276_v10 = vmul.f32 0.001953125, %v275_v9 }
 0x346   :  { %v280_v11 = vrot.slane %v276_v10, %v1075_v8 }
 0x348   :  { %v1078_v12 = vsub.f32 %v238_v46, %v280_v11  ;;  %v1080_v13 = vsub.f32 %v241_v48, %v280_v11  ;;  %v1082_v14 = vsub.f32 %v246_v51, %v280_v11  ;;  %v1084_v15 = vsub.f32 %v249_v54, %v280_v11  ;;  %v906_v46 = vld [vmem:[%s1215_s2 + $0x28] sm:$0xff]   ;;  %v908_v48 = vld [vmem:[%s1215_s2 + $0x30] sm:$0xff]   ;;  %v911_v51 = vld [vmem:[%s1215_s2 + $0x80] sm:$0xff]  }
 0x349   :  { %830 = vmatpush3.bf16.msra.mxu1 %v906_v46 }
 0x34a   :  { %v285_v16 = vmul.f32 %v1078_v12, %v1078_v12  ;;  %v286_v17 = vmul.f32 %v1080_v13, %v1080_v13  ;;  %v287_v18 = vmul.f32 %v1082_v14, %v1082_v14  ;;  %v288_v20 = vmul.f32 %v1084_v15, %v1084_v15  ;;  %831 = vmatprep.subr.bf16.mxu1 %v907_v47 }
 0x34c   :  { %v289_v19 = vadd.f32 %v286_v17, %v285_v16 }
 0x34d   :  { %832 = vmatpush3.bf16.msra.mxu1 %v908_v48 }
 0x34e   :  { %v290_v21 = vadd.f32 %v289_v19, %v287_v18  ;;  %833 = vmatprep.subr.bf16.mxu1 %v909_v49 }
 0x350   :  { %v291_v22 = vadd.f32 %v290_v21, %v288_v20 }
 0x351   :  { %834 = vmatpush3.bf16.msra.mxu1 %v910_v50 }
 0x352   :  { %v292_v23 = vrot.slane %v291_v22, 4  ;;  %857 = vmatprep.subr.bf16.mxu1 %v911_v51 }
 0x354   :  { %v293_v24 = vadd.f32 %v292_v23, %v291_v22 }
 0x356   :  { %v294_v25 = vrot.slane %v293_v24, 2 }
 0x358   :  { %v295_v26 = vadd.f32 %v294_v25, %v293_v24  ;;  %v912_v25 = vld [vmem:[%s1215_s2 + $0x88] sm:$0xff]  }
 0x35a   :  { %v296_v27 = vrot.slane %v295_v26, 1 }
 0x35c   :  { %v297_v28 = vadd.f32 %v296_v27, %v295_v26  ;;  %v913_v27 = vld [vmem:[%s1215_s2 + $0x90] sm:$0xff]  }
 0x35e   :  { %298 = vrot.lane.b32.xlu0 %v297_v28, %s926_s1 }
 0x3d0   :  { %v299_v29 = vpop.permute.xlu0 %298 }
 0x3d1   :  { %v300_v30 = vadd.f32 %v299_v29, %v297_v28 }
 0x3d3   :  { %301 = vrot.lane.b32.xlu1 %v300_v30, %s927_s11 }
 0x445   :  { %v302_v31 = vpop.permute.xlu1 %301 }
 0x446   :  { %v303_v32 = vadd.f32 %v302_v31, %v300_v30  ;;  %v914_v31 = vld [vmem:[%s1215_s2 + $0x98] sm:$0xff]  }
 0x448   :  { %304 = vrot.lane.b32.xlu0 %v303_v32, %s928_s0 }
 0x4ba   :  { %v305_v36 = vpop.permute.xlu0 %304 }
 0x4bb   :  { %v306_v38 = vadd.f32 %v305_v36, %v303_v32  ;;  %v918_v36 = vld [vmem:[%s1215_s2 + $0xb8] sm:$0xff]  }
 0x4bd   :  { %307 = vrot.lane.b32.xlu1 %v306_v38, %s924_s30 }
 0x52f   :  { %v308_v52 = vpop.permute.xlu1 %307 }
 0x530   :  { %v309_v53 = vadd.f32 %v308_v52, %v306_v38 }
 0x532   :  { %v310_v54 = vmul.f32 0.001953125, %v309_v53 }
 0x534   :  { %v311_v55 = vadd.f32 1e-05, %v310_v54 }
 0x536   :  { %919 = vrsqrt.f32 %v311_v55 }
 0x540   :  { %v920_v57 = vpop.eup %919 }
 0x541   :  { %v313_v58 = vmul.f32 %v920_v57, %v253_v56 }
 0x543   :  { %v318_v59 = vrot.slane %v313_v58, %v1075_v8 }
 0x545   :  { %v320_v61 = vmul.f32 %v318_v59, %v1078_v12  ;;  %v321_v62 = vmul.f32 %v318_v59, %v1080_v13  ;;  %v322_v63 = vmul.f32 %v318_v59, %v1082_v14  ;;  %v323_v0 = vmul.f32 %v318_v59, %v1084_v15 }
 0x547   :  { %v330_v1 = vadd.f32 %v793_v60, %v320_v61  ;;  %v331_v2 = vadd.f32 %v793_v60, %v321_v62  ;;  %v332_v3 = vadd.f32 %v793_v60, %v322_v63  ;;  %v333_v4 = vadd.f32 %v793_v60, %v323_v0 }
 0x549   :  { %v334_v5 = vmax.f32 %v330_v1, 0.0  ;;  %v335_v6 = vmax.f32 %v331_v2, 0.0  ;;  %v336_v7 = vmax.f32 %v332_v3, 0.0  ;;  %v337_v9 = vmax.f32 %v333_v4, 0.0 }
 0x54b   :  { %v346_v10 = vrot.slane %v334_v5, 7  ;;  %v347_v11 = vrot.slane %v335_v6, 7  ;;  %v349_v16 = vrot.slane %v336_v7, 7  ;;  %v350_v17 = vrot.slane %v337_v9, 7 }
 0x54c   :  { %v362_v18 = vrot.slane %v334_v5, 1  ;;  %v363_v12 = vrot.slane %v335_v6, 1  ;;  %v365_v19 = vrot.slane %v336_v7, 1  ;;  %v366_v13 = vrot.slane %v337_v9, 1 }
 0x54d   :  { %v348_v14 = vsel %vm52_vm3, %v346_v10, %v347_v11  ;;  %v351_v15 = vsel %vm52_vm3, %v349_v16, %v350_v17  ;;  %356 = vst [vmem:[#allocation3] sm:$0xfe] %v346_v10  ;;  %358 = vst [vmem:[#allocation3 + $0x30] sm:$0xfe] %v349_v16  ;;  %v391_v20 = vpack.c.bf16 %v335_v6, %v334_v5 }
 0x54e   :  { %v364_v21 = vsel %vm72_vm0, %v362_v18, %v363_v12  ;;  %v367_v22 = vsel %vm72_vm0, %v365_v19, %v366_v13  ;;  %373 = vst [vmem:[#allocation3 + $0x28] sm:$0x7f] %v363_v12  ;;  %375 = vst [vmem:[#allocation3 + $0x58] sm:$0x7f] %v366_v13  ;;  %v394_v26 = vpack.c.bf16 %v337_v9, %v336_v7 }
 0x54f   :  { %620 = vmatprep.mubr.bf16.mxu1 %v391_v20 }
 0x554   :  { %v378_v23 = vld [vmem:[#allocation3] sm:$0xff]  ;;  %v384_v28 = vld [vmem:[#allocation3 + $0x30] sm:$0xff] }
 0x555   :  { %v390_v24 = vpack.c.bf16 %v348_v14, %v378_v23  ;;  %v383_v29 = vld [vmem:[#allocation3 + $0x28] sm:$0xff]  ;;  %v393_v30 = vpack.c.bf16 %v351_v15, %v384_v28  ;;  %v389_v37 = vld [vmem:[#allocation3 + $0x58] sm:$0xff] }
 0x556   :  { %v392_v32 = vpack.c.bf16 %v383_v29, %v364_v21  ;;  %v395_v38 = vpack.c.bf16 %v389_v37, %v367_v22 }
 0x557   :  { %621 = vmatmul.mubr.bf16.vlgmr.msra.gmra.mrb[0].mxu1 %v390_v24 }
 0x558   :  { %858 = vmatpush3.bf16.msra.mxu1 %v911_v51  ;;  %628 = vmatprep.mubr.bf16.mxu1 %v394_v26 }
 0x559   :  { %859 = vmatprep.subr.bf16.mxu1 %v912_v25 }
 0x55c   :  { %860 = vmatpush3.bf16.msra.mxu1 %v912_v25 }
 0x55d   :  { %861 = vmatprep.subr.bf16.mxu1 %v913_v27 }
 0x55f   :  { %629 = vmatmul.mubr.bf16.gmra.mrb[4].mxu1 %v393_v30 }
 0x560   :  { %862 = vmatpush3.bf16.msra.mxu1 %v913_v27  ;;  %873 = vmatprep.mubr.bf16.mxu1 %v392_v32 }
 0x561   :  { %863 = vmatprep.subr.bf16.mxu1 %v914_v31 }
 0x564   :  { %864 = vmatpush3.bf16.msra.mxu1 %v914_v31 }
 0x565   :  { %865 = vmatprep.subr.bf16.mxu1 %v915_v33 }
 0x568   :  { %866 = vmatpush3.bf16.msra.mxu1 %v915_v33 }
 0x569   :  { %867 = vmatprep.subr.bf16.mxu1 %v916_v34 }
 0x56c   :  { %868 = vmatpush3.bf16.msra.mxu1 %v916_v34 }
 0x56d   :  { %869 = vmatprep.subr.bf16.mxu1 %v917_v35 }
 0x570   :  { %870 = vmatpush3.bf16.msra.mxu1 %v917_v35 }
 0x571   :  { %871 = vmatprep.subr.bf16.mxu1 %v918_v36 }
 0x574   :  { %872 = vmatpush3.bf16.msra.mxu1 %v918_v36 }
 0x577   :  { %874 = vmatmul.mubr.bf16.vlgmr.msra.gmra.mrb[8].mxu1 %v395_v38 }
 0x62a   :  { %v835_v39 = vpop.f32.mrb[0].mxu1 }
 0x62b   :  { %v836_v40 = vpop.f32.mrb[1].mxu1 }
 0x62c   :  { %v837_v41 = vadd.f32 %v836_v40, %v835_v39  ;;  %v838_v42 = vpop.f32.mrb[2].mxu1 }
 0x62d   :  { %v839_v43 = vpop.f32.mrb[3].mxu1 }
 0x62e   :  { %v840_v44 = vadd.f32 %v839_v43, %v838_v42  ;;  %v686_v42 = vld [vmem:[%s1218_s5] sm:$0x1] }
 0x632   :  { %v841_v45 = vpop.f32.mrb[4].mxu1 }
 0x633   :  { %v842_v46 = vpop.f32.mrb[5].mxu1 }
 0x634   :  { %v843_v47 = vadd.f32 %v842_v46, %v841_v45  ;;  %v844_v48 = vpop.f32.mrb[6].mxu1  ;;  %v818_v46 = vld [vmem:[%s1219_s6] ss:$0 sm:$0xff] }
 0x635   :  { %v845_v49 = vpop.f32.mrb[7].mxu1 }
 0x636   :  { %v846_v50 = vadd.f32 %v845_v49, %v844_v48 }
 0x64a   :  { %v875_v51 = vpop.f32.mrb[8].mxu1 }
 0x64b   :  { %v680_v52 = vadd.f32 %v875_v51, %v843_v47  ;;  %v671_v53 = vpop.f32.mrb[9].mxu1 }
 0x64c   :  { %v672_v54 = vadd.f32 %v837_v41, %v671_v53  ;;  %v876_v55 = vpop.f32.mrb[10].mxu1 }
 0x64d   :  { %v683_v56 = vadd.f32 %v876_v55, %v846_v50  ;;  %v674_v57 = vpop.f32.mrb[11].mxu1 }
 0x64e   :  { %v675_v58 = vadd.f32 %v840_v44, %v674_v57 }
 0x650   :  { %v688_v59 = vadd.f32 %v675_v58, %v672_v54 }
 0x652   :  { %v689_v60 = vadd.f32 %v688_v59, %v680_v52 }
 0x654   :  { %v690_v61 = vadd.f32 %v689_v60, %v683_v56 }
 0x656   :  { %v691_v62 = vrot.slane %v690_v61, 4 }
 0x658   :  { %v692_v63 = vadd.f32 %v691_v62, %v690_v61 }
 0x65a   :  { %v693_v0 = vrot.slane %v692_v63, 2 }
 0x65c   :  { %v694_v1 = vadd.f32 %v693_v0, %v692_v63 }
 0x65e   :  { %v695_v2 = vrot.slane %v694_v1, 1 }
 0x660   :  { %v696_v3 = vadd.f32 %v695_v2, %v694_v1 }
 0x662   :  { %697 = vrot.lane.b32.xlu0 %v696_v3, %s926_s1 }
 0x6d4   :  { %v698_v4 = vpop.permute.xlu0 %697 }
 0x6d5   :  { %v699_v5 = vadd.f32 %v698_v4, %v696_v3 }
 0x6d7   :  { %700 = vrot.lane.b32.xlu1 %v699_v5, %s927_s11 }
 0x749   :  { %v701_v6 = vpop.permute.xlu1 %700 }
 0x74a   :  { %v702_v7 = vadd.f32 %v701_v6, %v699_v5 }
 0x74c   :  { %703 = vrot.lane.b32.xlu0 %v702_v7, %s928_s0 }
 0x7be   :  { %v704_v9 = vpop.permute.xlu0 %703 }
 0x7bf   :  { %v705_v10 = vadd.f32 %v704_v9, %v702_v7 }
 0x7c1   :  { %706 = vrot.lane.b32.xlu1 %v705_v10, %s924_s30 }
 0x833   :  { %v707_v11 = vpop.permute.xlu1 %706 }
 0x834   :  { %v708_v16 = vadd.f32 %v707_v11, %v705_v10 }
 0x836   :  { %v709_v17 = vmul.f32 0.001953125, %v708_v16 }
 0x838   :  { %v713_v18 = vrot.slane %v709_v17, %v1075_v8 }
 0x83a   :  { %v714_v12 = vsub.f32 %v672_v54, %v713_v18  ;;  %v715_v19 = vsub.f32 %v675_v58, %v713_v18  ;;  %v716_v13 = vsub.f32 %v680_v52, %v713_v18  ;;  %v717_v14 = vsub.f32 %v683_v56, %v713_v18 }
 0x83c   :  { %v718_v15 = vmul.f32 %v714_v12, %v714_v12  ;;  %v719_v20 = vmul.f32 %v715_v19, %v715_v19  ;;  %v720_v21 = vmul.f32 %v716_v13, %v716_v13  ;;  %v721_v23 = vmul.f32 %v717_v14, %v717_v14 }
 0x83e   :  { %v722_v22 = vadd.f32 %v719_v20, %v718_v15 }
 0x840   :  { %v723_v24 = vadd.f32 %v722_v22, %v720_v21 }
 0x842   :  { %v724_v25 = vadd.f32 %v723_v24, %v721_v23 }
 0x844   :  { %v725_v26 = vrot.slane %v724_v25, 4 }
 0x846   :  { %v726_v27 = vadd.f32 %v725_v26, %v724_v25 }
 0x848   :  { %v727_v28 = vrot.slane %v726_v27, 2 }
 0x84a   :  { %v728_v29 = vadd.f32 %v727_v28, %v726_v27 }
 0x84c   :  { %v729_v30 = vrot.slane %v728_v29, 1 }
 0x84e   :  { %v730_v31 = vadd.f32 %v729_v30, %v728_v29 }
 0x850   :  { %731 = vrot.lane.b32.xlu0 %v730_v31, %s926_s1 }
 0x8c2   :  { %v732_v32 = vpop.permute.xlu0 %731 }
 0x8c3   :  { %v733_v33 = vadd.f32 %v732_v32, %v730_v31 }
 0x8c5   :  { %734 = vrot.lane.b32.xlu1 %v733_v33, %s927_s11 }
 0x937   :  { %v735_v34 = vpop.permute.xlu1 %734 }
 0x938   :  { %v736_v35 = vadd.f32 %v735_v34, %v733_v33 }
 0x93a   :  { %737 = vrot.lane.b32.xlu0 %v736_v35, %s928_s0 }
 0x9ac   :  { %v738_v36 = vpop.permute.xlu0 %737 }
 0x9ad   :  { %v739_v37 = vadd.f32 %v738_v36, %v736_v35 }
 0x9af   :  { %740 = vrot.lane.b32.xlu1 %v739_v37, %s924_s30 }
 0xa21   :  { %v741_v38 = vpop.permute.xlu1 %740 }
 0xa22   :  { %v742_v39 = vadd.f32 %v741_v38, %v739_v37 }
 0xa24   :  { %v743_v40 = vmul.f32 0.001953125, %v742_v39 }
 0xa26   :  { %v744_v41 = vadd.f32 1e-05, %v743_v40 }
 0xa28   :  { %921 = vrsqrt.f32 %v744_v41 }
 0xa32   :  { %v922_v43 = vpop.eup %921 }
 0xa33   :  { %v746_v44 = vmul.f32 %v922_v43, %v686_v42 }
 0xa35   :  { %v751_v45 = vrot.slane %v746_v44, %v1075_v8 }
 0xa37   :  { %v753_v47 = vmul.f32 %v751_v45, %v714_v12  ;;  %v754_v48 = vmul.f32 %v751_v45, %v715_v19  ;;  %v755_v49 = vmul.f32 %v751_v45, %v716_v13  ;;  %v756_v50 = vmul.f32 %v751_v45, %v717_v14 }
 0xa39   :  { %v763_v51 = vadd.f32 %v818_v46, %v753_v47  ;;  %v764_v52 = vadd.f32 %v818_v46, %v754_v48  ;;  %v765_v53 = vadd.f32 %v818_v46, %v755_v49  ;;  %v766_v54 = vadd.f32 %v818_v46, %v756_v50 }
 0xa3b   :  { %v767_v55 = vmax.f32 %v763_v51, 0.0  ;;  %v768_v56 = vmax.f32 %v764_v52, 0.0  ;;  %v769_v57 = vmax.f32 %v765_v53, 0.0  ;;  %v770_v58 = vmax.f32 %v766_v54, 0.0 }
 0xa3d   :  { %771 = vst [vmem:[%s1220_s7] sm:$0xff] %v767_v55  ;;  %772 = vst [vmem:[%s1220_s7 + $0x8] sm:$0xff] %v768_v56 }
 0xa3e   :  { %773 = vst [vmem:[%s1220_s7 + $0x10] sm:$0xff] %v769_v57  ;;  %774 = vst [vmem:[%s1220_s7 + $0x18] sm:$0xff] %v770_v58 }

</bundles_post_ra>
